<compile_context>
chip_gen: v7x
topology: tpu7x:2x2x1
jax: 0.10.0
libtpu: 0.0.40
codegen_flags: <defaults>
</compile_context>

<pallas_src>
import jax
import jax.numpy as jnp
from jax.experimental import pallas as pl
from jax.experimental.pallas import tpu as pltpu


def _round_up(n: int, m: int) -> int:
    return ((n + m - 1) // m) * m


# ---------------------------------------------------------------------------
# Shared in-kernel math.
# x: (Bt, I) f32, h: (Bt, Hp) f32, wx: (I, 2Hp) bf16, wh: (Hp, 2Hp) bf16,
# bx/bh: (1, 2Hp) f32.  Column blocks of wx/wh/bx/bh are [forget | new].
# ---------------------------------------------------------------------------
def _mgu_math(x, h, wx, wh, bx, bh):
    Hp = wh.shape[0]
    # Two dense MXU matmuls: bf16 inputs, f32 accumulation, no zero blocks.
    gx = jnp.dot(x.astype(jnp.bfloat16), wx,
                 preferred_element_type=jnp.float32) + bx      # [i_f | i_n]
    gh = jnp.dot(h.astype(jnp.bfloat16), wh,
                 preferred_element_type=jnp.float32) + bh      # [h_f | h_n]
    # Lane-tile-aligned column split at Hp (Hp is a multiple of 128).
    f = (gx[:, :Hp] + gh[:, :Hp] + 1.0) * 0.5      # scaled-add "hardsigmoid"
    newgate = gx[:, Hp:] + f * gh[:, Hp:]          # hardtanh / tanh == identity
    # Literal transcription of hy_add([newgate, (1-f)*newgate, f*hx]).
    return newgate + (1.0 - f) * newgate + f * h


def _mgu_cell_kernel(x_ref, h_ref, wx_ref, wh_ref, bx_ref, bh_ref, out_ref):
    out_ref[...] = _mgu_math(x_ref[...], h_ref[...], wx_ref[...], wh_ref[...],
                             bx_ref[...], bh_ref[...]).astype(out_ref.dtype)


def _mgu_seq_kernel(x_ref, h0_ref, wx_ref, wh_ref, bx_ref, bh_ref, out_ref, h_sc):
    # Time is the innermost grid axis; reload the initial hidden state into the
    # VMEM carry at t == 0 of every batch tile.
    @pl.when(pl.program_id(1) == 0)
    def _():
        h_sc[...] = h0_ref[...]

    hy = _mgu_math(x_ref[0], h_sc[...], wx_ref[...], wh_ref[...],
                   bx_ref[...], bh_ref[...])
    h_sc[...] = hy
    out_ref[0] = hy.astype(out_ref.dtype)


# ---------------------------------------------------------------------------
# One-time parameter packing (hoisted out of the step).
# w_ih: (2H, I), w_hh: (2H, H), b_ih/b_hh: (2H,).
# ---------------------------------------------------------------------------
def make_fsumgu_params(w_ih, w_hh, b_ih, b_hh):
    two_h, I = w_ih.shape
    H = two_h // 2
    Hp = _round_up(H, 128)      # lane-dense gate/hidden width; 2*Hp % 256 == 0

    w_ih = jnp.asarray(w_ih, jnp.float32)
    w_hh = jnp.asarray(w_hh, jnp.float32)
    b_ih = jnp.asarray(b_ih, jnp.float32)
    b_hh = jnp.asarray(b_hh, jnp.float32)

    # Wx: (I, 2*Hp) -- columns [forget | new] of the input path.
    wx = jnp.zeros((I, 2 * Hp), jnp.float32)
    wx = wx.at[:, 0:H].set(w_ih[:H, :].T)
    wx = wx.at[:, Hp:Hp + H].set(w_ih[H:, :].T)

    # Wh: (Hp, 2*Hp) -- rows H..Hp are zero (matches the column-padded h carry).
    wh = jnp.zeros((Hp, 2 * Hp), jnp.float32)
    wh = wh.at[:H, 0:H].set(w_hh[:H, :].T)
    wh = wh.at[:H, Hp:Hp + H].set(w_hh[H:, :].T)

    bx = jnp.zeros((1, 2 * Hp), jnp.float32)
    bx = bx.at[0, 0:H].set(b_ih[:H])
    bx = bx.at[0, Hp:Hp + H].set(b_ih[H:])
    bh = jnp.zeros((1, 2 * Hp), jnp.float32)
    bh = bh.at[0, 0:H].set(b_hh[:H])
    bh = bh.at[0, Hp:Hp + H].set(b_hh[H:])

    # TODO(synk): on v7x, storing wx/wh in fp8 would halve weight bytes if the
    #             accuracy budget allows; keep bf16 for v5e/v6e compatibility.
    return dict(wx=wx.astype(jnp.bfloat16), wh=wh.astype(jnp.bfloat16),
                bx=bx, bh=bh, I=I, H=H, Hp=Hp)


def _batch_tiling(B: int, batch_tile: int):
    Bt = min(max(batch_tile, 8), _round_up(B, 8))
    Bt = max(8, (Bt // 8) * 8)
    Bp = _round_up(B, Bt)
    # v7x shards the "parallel" batch axis over 2 TensorCores: make sure the
    # grid has >= 2 steps when possible so neither core idles.
    if Bp // Bt == 1 and Bt >= 16:
        Bt = max(8, (Bt // 2 // 8) * 8)
        Bp = _round_up(B, Bt)
    return Bt, Bp


def _vmem_limit_bytes(Bt: int, I: int, Hp: int) -> int:
    weights = (I + Hp) * (2 * Hp) * 2            # bf16, single-buffered
    biases = 2 * (2 * Hp) * 4
    act_in = 2 * Bt * (I + Hp) * 4               # x/h blocks, double-buffered
    act_out = 2 * Bt * Hp * 4
    interm = Bt * (2 * Hp) * 4 * 2 + Bt * Hp * 4 * 4   # gx, gh, f, newgate, hy
    need = weights + biases + act_in + act_out + interm
    return int(min(64 * 2**20, max(16 * 2**20, 2 * need)))


# ---------------------------------------------------------------------------
# Single step:  x (B, I), hx (B, H)  ->  hy (B, H)
# ---------------------------------------------------------------------------
def fsumgu_cell(params, x, hx, *, batch_tile=256):
    B, I = x.shape
    Bh, H = hx.shape
    assert Bh == B and I == params["I"] and H == params["H"]
    Hp = params["Hp"]
    Bt, Bp = _batch_tiling(B, batch_tile)

    xp = x.astype(jnp.float32)
    hp = hx.astype(jnp.float32)
    if Bp != B:
        xp = jnp.pad(xp, ((0, Bp - B), (0, 0)))
    if Bp != B or Hp != H:
        hp = jnp.pad(hp, ((0, Bp - B), (0, Hp - H)))

    resident = dict(pipeline_mode=pl.Buffered(1))   # constant blocks: 1 buffer
    out = pl.pallas_call(
        _mgu_cell_kernel,
        out_shape=jax.ShapeDtypeStruct((Bp, Hp), jnp.float32),
        grid=(Bp // Bt,),
        in_specs=[
            pl.BlockSpec((Bt, I), lambda i: (i, 0)),              # x (f32)
            pl.BlockSpec((Bt, Hp), lambda i: (i, 0)),             # hx (f32, once)
            pl.BlockSpec((I, 2 * Hp), lambda i: (0, 0), **resident),
            pl.BlockSpec((Hp, 2 * Hp), lambda i: (0, 0), **resident),
            pl.BlockSpec((1, 2 * Hp), lambda i: (0, 0), **resident),
            pl.BlockSpec((1, 2 * Hp), lambda i: (0, 0), **resident),
        ],
        out_specs=pl.BlockSpec((Bt, Hp), lambda i: (i, 0)),
        compiler_params=pltpu.CompilerParams(
            dimension_semantics=("parallel",),
            vmem_limit_bytes=_vmem_limit_bytes(Bt, I, Hp)),
    )(xp, hp, params["wx"], params["wh"], params["bx"], params["bh"])

    if Bp != B or Hp != H:
        out = out[:B, :H]
    return out


# ---------------------------------------------------------------------------
# Full recurrence in ONE pallas_call (weights fetched from HBM once per tile):
#   x_seq (T, B, I), h0 (B, H)  ->  hidden states (T, B, H)
# ---------------------------------------------------------------------------
def fsumgu_sequence(params, x_seq, h0, *, batch_tile=256):
    T, B, I = x_seq.shape
    Bh, H = h0.shape
    assert Bh == B and I == params["I"] and H == params["H"]
    Hp = params["Hp"]
    Bt, Bp = _batch_tiling(B, batch_tile)

    xp = x_seq.astype(jnp.float32)
    hp = h0.astype(jnp.float32)
    if Bp != B:
        xp = jnp.pad(xp, ((0, 0), (0, Bp - B), (0, 0)))
    if Bp != B or Hp != H:
        hp = jnp.pad(hp, ((0, Bp - B), (0, Hp - H)))

    resident = dict(pipeline_mode=pl.Buffered(1))
    out = pl.pallas_call(
        _mgu_seq_kernel,
        out_shape=jax.ShapeDtypeStruct((T, Bp, Hp), jnp.float32),
        grid=(Bp // Bt, T),                 # batch "parallel", time sequential
        in_specs=[
            pl.BlockSpec((1, Bt, I), lambda b, t: (t, b, 0)),     # x_t
            pl.BlockSpec((Bt, Hp), lambda b, t: (b, 0)),          # h0
            pl.BlockSpec((I, 2 * Hp), lambda b, t: (0, 0), **resident),
            pl.BlockSpec((Hp, 2 * Hp), lambda b, t: (0, 0), **resident),
            pl.BlockSpec((1, 2 * Hp), lambda b, t: (0, 0), **resident),
            pl.BlockSpec((1, 2 * Hp), lambda b, t: (0, 0), **resident),
        ],
        out_specs=pl.BlockSpec((1, Bt, Hp), lambda b, t: (t, b, 0)),
        scratch_shapes=[pltpu.VMEM((Bt, Hp), jnp.float32)],       # h carry
        compiler_params=pltpu.CompilerParams(
            dimension_semantics=("parallel", "arbitrary"),
            vmem_limit_bytes=_vmem_limit_bytes(Bt, I, Hp)),
    )(xp, hp, params["wx"], params["wh"], params["bx"], params["bh"])

    if Bp != B or Hp != H:
        out = out[:, :B, :H]
    return out


# ---------------------------------------------------------------------------
# Pure-JAX reference with the same bf16-input / f32-accumulate numerics.
# ---------------------------------------------------------------------------
def _reference(x, hx, w_ih, w_hh, b_ih, b_hh):
    r = lambda a: a.astype(jnp.bfloat16).astype(jnp.float32)
    gate_i = r(x) @ r(w_ih).T + b_ih
    gate_h = r(hx) @ r(w_hh).T + b_hh
    H = hx.shape[1]
    i_f, i_n = gate_i[:, :H], gate_i[:, H:]
    h_f, h_n = gate_h[:, :H], gate_h[:, H:]
    f = (i_f + h_f + 1.0) * 0.5
    newgate = i_n + f * h_n
    return newgate + (1.0 - f) * newgate + f * hx


def _make_weights(key, I, H):
    k1, k2, k3, k4 = jax.random.split(key, 4)
    bi = 1.0 / jnp.sqrt(jnp.float32(I))
    bh = 1.0 / jnp.sqrt(jnp.float32(H))
    w_ih = jax.random.uniform(k1, (2 * H, I), jnp.float32, -bi, bi)
    b_ih = jax.random.uniform(k2, (2 * H,), jnp.float32, -bi, bi)
    w_hh = jax.random.uniform(k3, (2 * H, H), jnp.float32, -bh, bh)
    b_hh = jax.random.uniform(k4, (2 * H,), jnp.float32, -bh, bh)
    return w_ih, w_hh, b_ih, b_hh


if __name__ == "__main__":
    key = jax.random.PRNGKey(0)
    kw1, kx1, kh1, kw2, kx2, kh2, kw3, kx3, kh3 = jax.random.split(key, 9)

    # --- Test 1: tiny single-step cell (exercises B < 8 and H < 128 padding). ---
    B, I, H = 2, 16, 32
    w_ih, w_hh, b_ih, b_hh = _make_weights(kw1, I, H)
    x = jax.random.uniform(kx1, (B, I), jnp.float32, -1.0, 1.0)
    hx = jax.random.uniform(kh1, (B, H), jnp.float32, -1.0, 1.0)
    params = make_fsumgu_params(w_ih, w_hh, b_ih, b_hh)
    hy = jax.block_until_ready(fsumgu_cell(params, x, hx))
    ref = _reference(x, hx, w_ih, w_hh, b_ih, b_hh)
    assert hy.shape == (B, H)
    assert jnp.allclose(hy, ref, atol=1e-4, rtol=1e-4), "cell (tiny) mismatch"

    # --- Test 2: multi-tile batch grid, B not a multiple of the batch tile. ---
    B, I, H = 20, 24, 40
    w_ih, w_hh, b_ih, b_hh = _make_weights(kw2, I, H)
    x = jax.random.uniform(kx2, (B, I), jnp.float32, -1.0, 1.0)
    hx = jax.random.uniform(kh2, (B, H), jnp.float32, -1.0, 1.0)
    params = make_fsumgu_params(w_ih, w_hh, b_ih, b_hh)
    hy = jax.block_until_ready(fsumgu_cell(params, x, hx, batch_tile=8))
    ref = _reference(x, hx, w_ih, w_hh, b_ih, b_hh)
    assert hy.shape == (B, H)
    assert jnp.allclose(hy, ref, atol=1e-4, rtol=1e-4), "cell (multi-tile) mismatch"

    # --- Test 3: in-kernel recurrent time loop vs step-by-step reference. ---
    T, B, I, H = 8, 4, 16, 32
    w_ih, w_hh, b_ih, b_hh = _make_weights(kw3, I, H)
    x_seq = jax.random.uniform(kx3, (T, B, I), jnp.float32, -1.0, 1.0)
    h0 = jax.random.uniform(kh3, (B, H), jnp.float32, -1.0, 1.0)
    params = make_fsumgu_params(w_ih, w_hh, b_ih, b_hh)
    hs = jax.block_until_ready(fsumgu_sequence(params, x_seq, h0))
    h_ref = h0
    refs = []
    for t in range(T):
        h_ref = _reference(x_seq[t], h_ref, w_ih, w_hh, b_ih, b_hh)
        refs.append(h_ref)
    ref_seq = jnp.stack(refs, axis=0)
    assert hs.shape == (T, B, H)
    assert jnp.allclose(hs, ref_seq, atol=2e-3, rtol=2e-3), "sequence mismatch"

    print("KERNEL_OK")
</pallas_src>

<mosaic_0001>
module attributes {stable_mosaic.version = 11 : i64} {
  func.func @_mgu_cell_kernel(%arg0: i32, %arg1: memref<8x16xf32, #tpu.memory_space<vmem>>, %arg2: memref<8x128xf32, #tpu.memory_space<vmem>>, %arg3: memref<16x256xbf16, #tpu.memory_space<vmem>>, %arg4: memref<128x256xbf16, #tpu.memory_space<vmem>>, %arg5: memref<1x256xf32, #tpu.memory_space<vmem>>, %arg6: memref<1x256xf32, #tpu.memory_space<vmem>>, %arg7: memref<8x128xf32, #tpu.memory_space<vmem>>) attributes {dimension_semantics = [#tpu.dimension_semantics<parallel>], iteration_bounds = array<i64: 1>, scalar_prefetch = 0 : i64, scratch_operands = 0 : i64, tpu.core_type = #tpu.core_type<tc>, window_params = [{transform_indices = @transform_0, window_bounds = array<i64: 8, 16>}, {transform_indices = @transform_1, window_bounds = array<i64: 8, 128>}, {pipeline_mode = #tpu.pipeline_mode<synchronous>, transform_indices = @transform_2, window_bounds = array<i64: 16, 256>}, {pipeline_mode = #tpu.pipeline_mode<synchronous>, transform_indices = @transform_3, window_bounds = array<i64: 128, 256>}, {pipeline_mode = #tpu.pipeline_mode<synchronous>, transform_indices = @transform_4, window_bounds = array<i64: 1, 256>}, {pipeline_mode = #tpu.pipeline_mode<synchronous>, transform_indices = @transform_5, window_bounds = array<i64: 1, 256>}, {transform_indices = @transform_6, window_bounds = array<i64: 8, 128>}]} {
    %c0 = arith.constant 0 : index
    %c0_0 = arith.constant 0 : index
    %0 = vector.load %arg1[%c0, %c0_0] : memref<8x16xf32, #tpu.memory_space<vmem>>, vector<8x16xf32>
    %c0_1 = arith.constant 0 : index
    %c0_2 = arith.constant 0 : index
    %1 = vector.load %arg2[%c0_1, %c0_2] : memref<8x128xf32, #tpu.memory_space<vmem>>, vector<8x128xf32>
    %c0_3 = arith.constant 0 : index
    %c0_4 = arith.constant 0 : index
    %2 = vector.load %arg3[%c0_3, %c0_4] : memref<16x256xbf16, #tpu.memory_space<vmem>>, vector<16x256xbf16>
    %c0_5 = arith.constant 0 : index
    %c0_6 = arith.constant 0 : index
    %3 = vector.load %arg4[%c0_5, %c0_6] : memref<128x256xbf16, #tpu.memory_space<vmem>>, vector<128x256xbf16>
    %c0_7 = arith.constant 0 : index
    %c0_8 = arith.constant 0 : index
    %4 = vector.load %arg5[%c0_7, %c0_8] : memref<1x256xf32, #tpu.memory_space<vmem>>, vector<1x256xf32>
    %c0_9 = arith.constant 0 : index
    %c0_10 = arith.constant 0 : index
    %5 = vector.load %arg6[%c0_9, %c0_10] : memref<1x256xf32, #tpu.memory_space<vmem>>, vector<1x256xf32>
    %6 = arith.truncf %0 : vector<8x16xf32> to vector<8x16xbf16>
    %cst = arith.constant dense<0.000000e+00> : vector<8x256xf32>
    %7 = tpu.matmul %6, %2, %cst {dimension_numbers = #tpu.dot_dimension_numbers<[1], [0], [0], [1], [0, 0, 1, 1], [], []>} : vector<8x16xbf16>, vector<16x256xbf16>, vector<8x256xf32> -> vector<8x256xf32>
    %8 = vector.broadcast %4 : vector<1x256xf32> to vector<8x256xf32>
    %9 = arith.addf %7, %8 : vector<8x256xf32>
    %10 = arith.truncf %1 : vector<8x128xf32> to vector<8x128xbf16>
    %cst_11 = arith.constant dense<0.000000e+00> : vector<8x256xf32>
    %11 = tpu.matmul %10, %3, %cst_11 {dimension_numbers = #tpu.dot_dimension_numbers<[1], [0], [0], [1], [0, 0, 1, 1], [], []>} : vector<8x128xbf16>, vector<128x256xbf16>, vector<8x256xf32> -> vector<8x256xf32>
    %12 = vector.broadcast %5 : vector<1x256xf32> to vector<8x256xf32>
    %13 = arith.addf %11, %12 : vector<8x256xf32>
    %14 = vector.extract_strided_slice %9 {offsets = [0, 0], sizes = [8, 128], strides = [1, 1]} : vector<8x256xf32> to vector<8x128xf32>
    %15 = vector.extract_strided_slice %13 {offsets = [0, 0], sizes = [8, 128], strides = [1, 1]} : vector<8x256xf32> to vector<8x128xf32>
    %16 = arith.addf %14, %15 : vector<8x128xf32>
    %cst_12 = arith.constant 1.000000e+00 : f32
    %17 = vector.broadcast %cst_12 : f32 to vector<8x128xf32>
    %18 = arith.addf %16, %17 : vector<8x128xf32>
    %cst_13 = arith.constant 5.000000e-01 : f32
    %19 = vector.broadcast %cst_13 : f32 to vector<8x128xf32>
    %20 = arith.mulf %18, %19 : vector<8x128xf32>
    %21 = vector.extract_strided_slice %9 {offsets = [0, 128], sizes = [8, 128], strides = [1, 1]} : vector<8x256xf32> to vector<8x128xf32>
    %22 = vector.extract_strided_slice %13 {offsets = [0, 128], sizes = [8, 128], strides = [1, 1]} : vector<8x256xf32> to vector<8x128xf32>
    %23 = arith.mulf %20, %22 : vector<8x128xf32>
    %24 = arith.addf %21, %23 : vector<8x128xf32>
    %cst_14 = arith.constant 1.000000e+00 : f32
    %25 = vector.broadcast %cst_14 : f32 to vector<8x128xf32>
    %26 = arith.subf %25, %20 : vector<8x128xf32>
    %27 = arith.mulf %26, %24 : vector<8x128xf32>
    %28 = arith.addf %24, %27 : vector<8x128xf32>
    %29 = arith.mulf %20, %1 : vector<8x128xf32>
    %30 = arith.addf %28, %29 : vector<8x128xf32>
    %c0_15 = arith.constant 0 : index
    %c0_16 = arith.constant 0 : index
    %31 = vector.load %arg7[%c0_15, %c0_16] : memref<8x128xf32, #tpu.memory_space<vmem>>, vector<8x128xf32>
    tpu.vector_store %arg7[%c0_15, %c0_16], %30 {strides = array<i32>} : memref<8x128xf32, #tpu.memory_space<vmem>>, vector<8x128xf32>,
    return
  }
  func.func @transform_0(%arg0: i32) -> (i32, i32) {
    %c0_i32 = arith.constant 0 : i32
    %c0_i32_0 = arith.constant 0 : i32
    return %arg0, %c0_i32 : i32, i32
  }
  func.func @transform_1(%arg0: i32) -> (i32, i32) {
    %c0_i32 = arith.constant 0 : i32
    %c0_i32_0 = arith.constant 0 : i32
    return %arg0, %c0_i32 : i32, i32
  }
  func.func @transform_2(%arg0: i32) -> (i32, i32) {
    %c0_i32 = arith.constant 0 : i32
    %c0_i32_0 = arith.constant 0 : i32
    %c0_i32_1 = arith.constant 0 : i32
    return %c0_i32, %c0_i32_0 : i32, i32
  }
  func.func @transform_3(%arg0: i32) -> (i32, i32) {
    %c0_i32 = arith.constant 0 : i32
    %c0_i32_0 = arith.constant 0 : i32
    %c0_i32_1 = arith.constant 0 : i32
    return %c0_i32, %c0_i32_0 : i32, i32
  }
  func.func @transform_4(%arg0: i32) -> (i32, i32) {
    %c0_i32 = arith.constant 0 : i32
    %c0_i32_0 = arith.constant 0 : i32
    %c0_i32_1 = arith.constant 0 : i32
    return %c0_i32, %c0_i32_0 : i32, i32
  }
  func.func @transform_5(%arg0: i32) -> (i32, i32) {
    %c0_i32 = arith.constant 0 : i32
    %c0_i32_0 = arith.constant 0 : i32
    %c0_i32_1 = arith.constant 0 : i32
    return %c0_i32, %c0_i32_0 : i32, i32
  }
  func.func @transform_6(%arg0: i32) -> (i32, i32) {
    %c0_i32 = arith.constant 0 : i32
    %c0_i32_0 = arith.constant 0 : i32
    return %arg0, %c0_i32 : i32, i32
  }
}

</mosaic_0001>

<bundles_post_ra>
// kernel: tpu_custom_call.1
= control target key start
LH: loop header
LB: loop body
LE: loop exit
PB: predicated region body
PF: predicated region fallthrough
CT: control target
= control target key end

     0   :  { %11 = vsyncpa [#allocation3], 0  ;;  %s607_s0 = inlined_call_operand.hbm [shape: f32[8,16], index: 0, kind: input, shape index: {}]   ;;  %s608_s1 = inlined_call_operand.hbm [shape: f32[8,128], index: 1, kind: input, shape index: {}]   ;;  %s609_s2 = inlined_call_operand.hbm [shape: bf16[16,256], index: 2, kind: input, shape index: {}]   ;;  %s610_s3 = inlined_call_operand.hbm [shape: bf16[128,256], index: 3, kind: input, shape index: {}]   ;;  %s611_s4 = inlined_call_operand.vmem [shape: f32[1,256], index: 4, kind: input, shape index: {}]   ;;  %s612_s5 = inlined_call_operand.vmem [shape: f32[1,256], index: 5, kind: input, shape index: {}]   ;;  %s613_s6 = inlined_call_operand.hbm [shape: f32[8,128], index: 6, kind: output, shape index: {}]  }
   0x1   :  { %12 = vsyncpa [#allocation6], 0 }
   0x2   :  { %13 = vsyncpa [#allocation9], 0 }
   0x3   :  { %14 = vsyncpa [#allocation4], 0  ;;  %s498_s21 = smov [#allocation5]   ;;  %s499_s23 = smov [#allocation2]  }
   0x4   :  { %s31_s22 = sshll.u32 %s498_s21, 4  ;;  %s21_s24 = sshll.u32 %s499_s23, 4  ;;  %s32_s22 = int_to_ptr.vmem [resolvable:$true] %s31_s22  ;;  %s22_s24 = int_to_ptr.vmem [resolvable:$true] %s21_s24 }
   0x5   :  { %s380_s27 = scalar_lea.hbm %s608_s1, 128 }
   0x6   :  { %p381_p0 = scmp.ne.s32.totalorder %s608_s1, %s380_s27  ;;  %p384_p1 = scmp.lt.u32.totalorder %s380_s27, %s608_s1 }
   0x8   :  { %p386_p2 = pnand %p384_p1, %p381_p0 }
   0xa   :  { %389 = shalt.err (!%p386_p2)
}
   0xb   :  { %s390_s8 = scalar_lea.vmem %s32_s22, 128  ;;  %p395_p4 = scmp.lt.s32.totalorder %s32_s22, %s32_s22 }
   0xc   :  { %p391_p3 = scmp.ne.s32.totalorder %s32_s22, %s390_s8  ;;  %p396_p5 = scmp.lt.s32.totalorder %s390_s8, %s390_s8 }
   0xe   :  { %p397_p6 = por %p396_p5, %p395_p4 }
  0x10   :  { %p398_p7 = pnand %p397_p6, %p391_p3 }
  0x12   :  { %401 = shalt.err (!%p398_p7)
}
  0x13   :  { %34 = dma.hbm_to_vmem [thread:$0]  %s608_s1, 128, %s32_s22, [#allocation6]  }
  0x14   :  { %s402_s13 = scalar_lea.hbm %s607_s0, 128 }
  0x15   :  { %p403_p8 = scmp.ne.s32.totalorder %s607_s0, %s402_s13  ;;  %p406_p9 = scmp.lt.u32.totalorder %s402_s13, %s607_s0 }
  0x17   :  { %p408_p10 = pnand %p406_p9, %p403_p8 }
  0x19   :  { %411 = shalt.err (!%p408_p10)
}
  0x1a   :  { %s412_s18 = scalar_lea.vmem %s22_s24, 128  ;;  %p417_p12 = scmp.lt.s32.totalorder %s22_s24, %s22_s24 }
  0x1b   :  { %p413_p11 = scmp.ne.s32.totalorder %s22_s24, %s412_s18  ;;  %p418_p13 = scmp.lt.s32.totalorder %s412_s18, %s412_s18 }
  0x1d   :  { %p419_p0 = por %p418_p13, %p417_p12 }
  0x1f   :  { %p420_p1 = pnand %p419_p0, %p413_p11 }
  0x21   :  { %423 = shalt.err (!%p420_p1)
}
  0x22   :  { %24 = dma.hbm_to_vmem [thread:$0]  %s607_s0, 128, %s22_s24, [#allocation3]  }
  0x23   :  { %s500_s20 = smov [#allocation7]   ;;  %s424_s25 = scalar_lea.hbm %s609_s2, 256 }
  0x24   :  { %s40_s21 = sshll.u32 %s500_s20, 4  ;;  %p425_p2 = scmp.ne.s32.totalorder %s609_s2, %s424_s25  ;;  %s41_s21 = int_to_ptr.vmem [resolvable:$true] %s40_s21 }
  0x25   :  { %p428_p3 = scmp.lt.u32.totalorder %s424_s25, %s609_s2 }
  0x27   :  { %p430_p4 = pnand %p428_p3, %p425_p2 }
  0x29   :  { %433 = shalt.err (!%p430_p4)
}
  0x2a   :  { %s434_s30 = scalar_lea.vmem %s41_s21, 256  ;;  %p439_p6 = scmp.lt.s32.totalorder %s41_s21, %s41_s21 }
  0x2b   :  { %p435_p5 = scmp.ne.s32.totalorder %s41_s21, %s434_s30  ;;  %p440_p7 = scmp.lt.s32.totalorder %s434_s30, %s434_s30 }
  0x2d   :  { %p441_p8 = por %p440_p7, %p439_p6 }
  0x2f   :  { %p442_p9 = pnand %p441_p8, %p435_p5 }
  0x31   :  { %445 = shalt.err (!%p442_p9)
}
  0x32   :  { %s501_s0 = smov 128   ;;  %s502_s24 = smov 8  }
  0x33   :  { %46 = dma.hbm_to_vmem [thread:$0]  %s609_s2, 256, %s41_s21, [#allocation6], %s501_s0, %s501_s0, %s502_s24  }
  0x34   :  { %s503_s9 = smov [#allocation8]   ;;  %s446_s13 = scalar_lea.hbm %s610_s3, 2048 }
  0x35   :  { %s52_s10 = sshll.u32 %s503_s9, 4  ;;  %p447_p10 = scmp.ne.s32.totalorder %s610_s3, %s446_s13  ;;  %s53_s10 = int_to_ptr.vmem [resolvable:$true] %s52_s10 }
  0x36   :  { %p450_p11 = scmp.lt.u32.totalorder %s446_s13, %s610_s3 }
  0x38   :  { %p452_p12 = pnand %p450_p11, %p447_p10 }
  0x3a   :  { %455 = shalt.err (!%p452_p12)
}
  0x3b   :  { %s456_s18 = scalar_lea.vmem %s53_s10, 2048  ;;  %p461_p0 = scmp.lt.s32.totalorder %s53_s10, %s53_s10 }
  0x3c   :  { %p457_p13 = scmp.ne.s32.totalorder %s53_s10, %s456_s18  ;;  %p462_p1 = scmp.lt.s32.totalorder %s456_s18, %s456_s18 }
  0x3e   :  { %p463_p2 = por %p462_p1, %p461_p0 }
  0x40   :  { %p464_p3 = pnand %p463_p2, %p457_p13 }
  0x42   :  { %467 = shalt.err (!%p464_p3)
}
  0x43   :  { %58 = dma.hbm_to_vmem [thread:$0]  %s610_s3, 2048, %s53_s10, [#allocation9], %s501_s0, %s501_s0, %s502_s24  }
  0x44   :  { %490 = dma.done.wait [#allocation3], 128  }
  0x45   :  { %491 = vsyncadd [#allocation3], 4294967168 }
  0x46   :  { %492 = dma.done.wait [#allocation6], 384  }
  0x47   :  { %493 = vsyncadd [#allocation6], 4294966912 }
  0x48   :  { %494 = dma.done.wait [#allocation9], 2048  }
  0x49   :  { %495 = vsyncadd [#allocation9], 4294965248  ;;  %v504_v0 = vmov 0   ;;  %v353_v1 = vld [vmem:[#allocation8 + $0x4] ss:$8 sps:$4 sm:$0xff]   ;;  %vm120_vm0 = vcmask 130048   ;;  %v100_v25 = vlaneseq }
  0x4a   :  { %156 = vmatprep.mubr.bf16.mxu0 %v504_v0  ;;  %289 = vmatprep.mubr.bf16.mxu1 %v504_v0  ;;  %v355_v2 = vld [vmem:[#allocation8] ss:$8 sps:$4 sm:$0xff]   ;;  %v356_v3 = vld [vmem:[#allocation8 + $0x14] ss:$8 sps:$4 sm:$0xff]   ;;  %v358_v4 = vld [vmem:[#allocation8 + $0x10] ss:$8 sps:$4 sm:$0xff]  }
  0x4b   :  { %257 = vmatprep.subr.bf16.mxu1 %v353_v1  ;;  %v359_v5 = vld [vmem:[#allocation8 + $0x24] ss:$8 sps:$4 sm:$0xff]   ;;  %v361_v6 = vld [vmem:[#allocation8 + $0x20] ss:$8 sps:$4 sm:$0xff]   ;;  %v362_v7 = vld [vmem:[#allocation8 + $0x34] ss:$8 sps:$4 sm:$0xff]  }
  0x4c   :  { %258 = vmatpush1.bf16.msra.mxu1 %v355_v2  ;;  %v373_v8 = vld [vmem:[#allocation7 + $0x4] ss:$8 sps:$4 sm:$0xff]   ;;  %v376_v9 = vld [vmem:[#allocation7] ss:$8 sps:$4 sm:$0xff]   ;;  %v76_v11 = vld [vmem:[#allocation2] sm:$0xff]  ;;  %v101_v28 = vshrl.u32 %v100_v25, 7 }
  0x4d   :  { %259 = vmatprep.subr.bf16.mxu1 %v356_v3  ;;  %v364_v10 = vld [vmem:[#allocation8 + $0x30] ss:$8 sps:$4 sm:$0xff]   ;;  %124 = vmatprep.subr.bf16.mxu0 %v373_v8  ;;  %v365_v12 = vld [vmem:[#allocation8 + $0x44] ss:$8 sps:$4 sm:$0xff]   ;;  %v98_v13 = vpack.c.bf16 %v76_v11, %v76_v11  ;;  %v367_v14 = vld [vmem:[#allocation8 + $0x40] ss:$8 sps:$4 sm:$0xff]  }
  0x4e   :  { %125 = vmatpush1.bf16.msra.mxu0 %v376_v9  ;;  %v368_v15 = vld [vmem:[#allocation8 + $0x54] ss:$8 sps:$4 sm:$0xff]   ;;  %v370_v16 = vld [vmem:[#allocation8 + $0x50] ss:$8 sps:$4 sm:$0xff]   ;;  %v371_v17 = vld [vmem:[#allocation8 + $0x64] ss:$8 sps:$4 sm:$0xff]  }
  0x4f   :  { %v375_v18 = vld [vmem:[#allocation8 + $0x60] ss:$8 sps:$4 sm:$0xff]   ;;  %v377_v19 = vld [vmem:[#allocation8 + $0x74] ss:$8 sps:$4 sm:$0xff]   ;;  %v379_v20 = vld [vmem:[#allocation8 + $0x70] ss:$8 sps:$4 sm:$0xff]  }
  0x50   :  { %260 = vmatpush1.bf16.msra.mxu1 %v358_v4  ;;  %v77_v21 = vld [vmem:[#allocation5] sm:$0xff]  ;;  %v102_v29 = vsub.s32 0, %v101_v28  ;;  %v96_v30 = vld [vmem:[%s611_s4] sm:$0x3]  ;;  %v106_v35 = vsub.s32 1, %v101_v28  ;;  %s505_s4 = smov [#allocation10]  }
  0x51   :  { %261 = vmatprep.subr.bf16.mxu1 %v359_v5  ;;  %328 = vmatmul.mubr.msk.bf16.vlgmr.msra.gmra.mrb[0].mxu0 %vm120_vm0, %v98_v13  ;;  %v165_v22 = vpack.c.bf16 %v77_v21, %v77_v21  ;;  %v97_v31 = vld [vmem:[%s612_s5] sm:$0x3]  ;;  %s315_s5 = sshll.u32 %s505_s4, 4  ;;  %s316_s5 = int_to_ptr.vmem [resolvable:$true] %s315_s5 }
  0x52   :  { %v103_v32 = vrot.slane %v96_v30, %v102_v29  ;;  %v170_v33 = vrot.slane %v97_v31, %v102_v29  ;;  %v174_v41 = vrot.slane %v97_v31, %v106_v35  ;;  %v107_v43 = vrot.slane %v96_v30, %v106_v35  ;;  %s468_s22 = scalar_lea.vmem %s316_s5, 128  ;;  %p473_p5 = scmp.lt.s32.totalorder %s316_s5, %s316_s5 }
  0x53   :  { %p469_p4 = scmp.ne.s32.totalorder %s316_s5, %s468_s22  ;;  %p474_p6 = scmp.lt.s32.totalorder %s468_s22, %s468_s22 }
  0x54   :  { %262 = vmatpush1.bf16.msra.mxu1 %v361_v6 }
  0x55   :  { %263 = vmatprep.subr.bf16.mxu1 %v362_v7  ;;  %p475_p7 = por %p474_p6, %p473_p5 }
  0x57   :  { %p476_p8 = pnand %p475_p7, %p469_p4 }
  0x58   :  { %264 = vmatpush1.bf16.msra.mxu1 %v364_v10 }
  0x59   :  { %265 = vmatprep.subr.bf16.mxu1 %v365_v12 }
  0x5c   :  { %266 = vmatpush1.bf16.msra.mxu1 %v367_v14 }
  0x5d   :  { %267 = vmatprep.subr.bf16.mxu1 %v368_v15 }
  0x60   :  { %268 = vmatpush1.bf16.msra.mxu1 %v370_v16 }
  0x61   :  { %269 = vmatprep.subr.bf16.mxu1 %v371_v17 }
  0x64   :  { %270 = vmatpush1.bf16.msra.mxu1 %v375_v18 }
  0x65   :  { %271 = vmatprep.subr.bf16.mxu1 %v377_v19 }
  0x68   :  { %272 = vmatpush1.bf16.msra.mxu1 %v379_v20 }
  0x6b   :  { %290 = vmatmul.mubr.bf16.vlgmr.msra.gmra.mrb[0].mxu1 %v165_v22 }
 0x124   :  { %v158_v23 = vpop.f32.mrb[0].mxu0 }
 0x125   :  { %v160_v24 = vpop.f32.mrb[1].mxu0  ;;  %v159_v34 = vadd.f32 %v158_v23, %v103_v32 }
 0x126   :  { %v162_v26 = vpop.f32.mrb[2].mxu0  ;;  %v161_v47 = vadd.f32 %v160_v24, %v107_v43 }
 0x127   :  { %v163_v27 = vpop.f32.mrb[3].mxu0 }
 0x13e   :  { %v291_v36 = vpop.f32.mrb[0].mxu1 }
 0x13f   :  { %v292_v37 = vadd.f32 %v291_v36, %v170_v33  ;;  %v293_v38 = vpop.f32.mrb[1].mxu1 }
 0x140   :  { %v295_v39 = vpop.f32.mrb[2].mxu1  ;;  %v294_v46 = vadd.f32 %v293_v38, %v174_v41 }
 0x141   :  { %v298_v40 = vadd.f32 %v292_v37, %v159_v34  ;;  %v296_v42 = vpop.f32.mrb[3].mxu1 }
 0x143   :  { %v299_v44 = vadd.f32 1.0, %v298_v40 }
 0x145   :  { %v300_v45 = vmul.f32 0.5, %v299_v44 }
 0x147   :  { %v301_v48 = vmul.f32 %v300_v45, %v294_v46  ;;  %v303_v49 = vsub.f32 1.0, %v300_v45  ;;  %v306_v53 = vmul.f32 %v300_v45, %v77_v21 }
 0x149   :  { %v302_v50 = vadd.f32 %v301_v48, %v161_v47 }
 0x14b   :  { %v304_v51 = vmul.f32 %v303_v49, %v302_v50 }
 0x14d   :  { %v305_v52 = vadd.f32 %v304_v51, %v302_v50 }
 0x14f   :  { %v307_v54 = vadd.f32 %v306_v53, %v305_v52 }
 0x151   :  { %308 = vst [vmem:[#allocation10] sm:$0xff] %v307_v54 }
 0x152   :  { %479 = shalt.err (!%p476_p8)
}
 0x153   :  { %s480_s26 = scalar_lea.hbm %s613_s6, 128 }
 0x154   :  { %p481_p9 = scmp.ne.s32.totalorder %s613_s6, %s480_s26  ;;  %p484_p10 = scmp.lt.u32.totalorder %s480_s26, %s613_s6 }
 0x156   :  { %p486_p11 = pnand %p484_p10, %p481_p9 }
 0x158   :  { %489 = shalt.err (!%p486_p11)
}
 0x159   :  { %318 = dma.vmem_to_hbm [thread:$0]  %s316_s5, 128, %s613_s6, [#allocation4]  }
 0x15a   :  { %496 = dma.done.wait [#allocation4], 128  }
 0x15b   :  { %497 = vsyncadd [#allocation4], 4294967168 }
 0x15c   :  { %322 = vsyncpa [#allocation3], 1 }
 0x15d   :  { %323 = vsyncpa [#allocation6], 1 }
 0x15e   :  { %324 = vsyncpa [#allocation9], 1 }
 0x15f   :  { %325 = vsyncpa [#allocation4], 1 }

</bundles_post_ra>
